<compile_context>
chip_gen: v7x
topology: tpu7x:2x2x1
jax: 0.10.0
libtpu: 0.0.40
codegen_flags: <defaults>
</compile_context>

<pallas_src>
import functools

import jax
import jax.numpy as jnp
from jax.experimental import pallas as pl
from jax.experimental.pallas import tpu as pltpu


# ----------------------------------------------------------------------------
# Kernel
# ----------------------------------------------------------------------------
def _afm_kernel(x_ref, wt_ref, b_ref, ht_ref, pt_ref, o_ref, *,
                pairs, emb_dim, transpose_in_kernel):
    """One batch tile of the AFM layer; batch is the lane (minor) axis."""
    if transpose_in_kernel:
        # x_ref: (TILE_B, F*E) exactly as laid out in HBM.  One in-register
        # XLU transpose moves the batch onto lanes; no extra HBM pass.
        xt = jnp.transpose(x_ref[...].astype(jnp.float32))      # (F*E, TILE_B)
    else:
        # x_ref already arrives as (F*E, TILE_B) (wrapper-side relayout).
        xt = x_ref[...].astype(jnp.float32)

    E = emb_dim
    # Pairwise element-wise interactions, concatenated along sublanes.  E is a
    # multiple of 8 here so every slab stays (8,128)-tile aligned (pure VPU);
    # pad each slab to 8 sublanes if E ever stops being a multiple of 8.
    prods = jnp.concatenate(
        [xt[i * E:(i + 1) * E, :] * xt[j * E:(j + 1) * E, :] for i, j in pairs],
        axis=0)                                                  # (P*E, TILE_B)
    prods_bf = prods.astype(jnp.bfloat16)

    # Attention MLP for ALL pairs as one flattened 2-D MXU matmul
    # (block-diagonal weights), bf16 operands with f32 accumulation.
    z = jnp.dot(wt_ref[...], prods_bf, preferred_element_type=jnp.float32)
    z = jnp.maximum(z + b_ref[...], 0.0)                         # (P*A, TILE_B)

    scores = jnp.dot(ht_ref[...], z.astype(jnp.bfloat16),
                     preferred_element_type=jnp.float32)         # (P, TILE_B)
    pv = jnp.dot(pt_ref[...], prods_bf,
                 preferred_element_type=jnp.float32)             # (P, TILE_B)

    # Stable softmax over the pair axis (sublanes), fused with the weighted
    # sum:  out[b] = sum_p softmax(scores)[p, b] * pv[p, b].
    m = jnp.max(scores, axis=0, keepdims=True)                   # (1, TILE_B)
    e = jnp.exp(scores - m)                                      # (P, TILE_B)
    denom = jnp.sum(e, axis=0, keepdims=True)                    # (1, TILE_B)
    num = jnp.sum(e * pv, axis=0, keepdims=True)                 # (1, TILE_B)
    o_ref[...] = (num * pl.reciprocal(denom, approx=True)).astype(o_ref.dtype)


# ----------------------------------------------------------------------------
# Parameter packing (done once at model init, NOT on the per-call path)
# ----------------------------------------------------------------------------
def build_afm_params(attention_W, attention_b, projection_h, projection_p,
                     *, num_fields):
    E, A = attention_W.shape
    F = num_fields
    pairs = tuple((i, j) for i in range(F) for j in range(i + 1, F))
    P = len(pairs)
    eye_p = jnp.eye(P, dtype=jnp.float32)
    wt = attention_W.T.astype(jnp.float32)                       # (A, E)
    return dict(
        num_fields=F, emb_dim=E, att_dim=A, pairs=pairs,
        # Block-diagonal / row-stacked slabs; bf16 for single-pass MXU matmuls.
        wt_big=jnp.kron(eye_p, wt).astype(jnp.bfloat16),                      # (P*A, P*E)
        ht_big=jnp.kron(eye_p, projection_h.reshape(1, A).astype(jnp.float32)
                        ).astype(jnp.bfloat16),                               # (P, P*A)
        pt_big=jnp.kron(eye_p, projection_p.reshape(1, E).astype(jnp.float32)
                        ).astype(jnp.bfloat16),                               # (P, P*E)
        b_big=jnp.tile(attention_b.reshape(A, 1).astype(jnp.float32), (P, 1)),  # (P*A, 1)
    )


# ----------------------------------------------------------------------------
# Wrapper
# ----------------------------------------------------------------------------
def _pick_tile(batch, tile_b):
    """Batch tile (lane width inside the kernel); multiple of 128 when B>=128."""
    if batch < 128:
        return batch                          # single full-extent block
    tb = max(128, (min(tile_b, batch) // 128) * 128)
    if tb >= batch and batch >= 256:
        # Keep >= 2 grid steps so the "parallel" batch axis can be sharded
        # across v7x's two TensorCores (megacore).
        tb = max(128, (batch // 2) // 128 * 128)
    return tb


def _afm_call(x, params, tb, *, transpose_in_kernel):
    B, F, E = x.shape
    pairs, A = params["pairs"], params["att_dim"]
    P = len(pairs)
    FE, PA, PE = F * E, P * A, P * E

    if transpose_in_kernel:
        x_in = x.reshape(B, FE)               # free reshape; no HBM relayout
        x_spec = pl.BlockSpec((tb, FE), lambda i: (i, 0))
    else:
        # Portable fallback: one wrapper-side relayout pass (still no pad pass;
        # the ragged last block is handled by the BlockSpec DMA clamp).
        x_in = jnp.transpose(x.reshape(B, FE))                  # (FE, B)
        x_spec = pl.BlockSpec((FE, tb), lambda i: (0, i))

    kernel = functools.partial(_afm_kernel, pairs=pairs, emb_dim=E,
                               transpose_in_kernel=transpose_in_kernel)
    itemsize = jnp.dtype(x.dtype).itemsize
    cost = pl.CostEstimate(
        flops=2 * B * (PA * PE + P * PA + P * PE) + 4 * B * PE,
        transcendentals=B * (P + 1),
        bytes_accessed=B * FE * itemsize + B * 4
                       + 2 * (PA * PE + P * PA + P * PE) + 4 * PA)

    out_row = pl.pallas_call(
        kernel,
        out_shape=jax.ShapeDtypeStruct((1, B), jnp.float32),
        grid_spec=pl.GridSpec(
            grid=(pl.cdiv(B, tb),),
            in_specs=[
                x_spec,
                pl.BlockSpec((PA, PE), lambda i: (0, 0)),
                pl.BlockSpec((PA, 1), lambda i: (0, 0)),
                pl.BlockSpec((P, PA), lambda i: (0, 0)),
                pl.BlockSpec((P, PE), lambda i: (0, 0)),
            ],
            out_specs=pl.BlockSpec((1, tb), lambda i: (0, i)),
        ),
        compiler_params=pltpu.CompilerParams(
            dimension_semantics=("parallel",),
            vmem_limit_bytes=32 * 1024 * 1024),
        cost_estimate=cost,
    )(x_in, params["wt_big"], params["b_big"], params["ht_big"],
      params["pt_big"])

    return out_row.reshape(B, 1)              # free reshape (same linear order)


_IN_KERNEL_RELAYOUT_OK = True   # flips off once if Mosaic rejects the transpose


def afm_forward(x, params, *, tile_b=4096):
    """AFM forward: x (B, F, E) -> (B, 1).  `params` from build_afm_params."""
    global _IN_KERNEL_RELAYOUT_OK
    B = x.shape[0]
    tb = _pick_tile(B, tile_b)
    if _IN_KERNEL_RELAYOUT_OK and tb % 128 == 0:
        try:
            return _afm_call(x, params, tb, transpose_in_kernel=True)
        except Exception:
            # Some Mosaic builds may not lower a (TILE_B, F*E) -> (F*E, TILE_B)
            # transpose with a sub-128 minor dim; fall back to wrapper relayout.
            _IN_KERNEL_RELAYOUT_OK = False
    return _afm_call(x, params, tb, transpose_in_kernel=False)


# ----------------------------------------------------------------------------
# Pure-JAX reference (high precision) for correctness checking
# ----------------------------------------------------------------------------
def afm_reference(x, attention_W, attention_b, projection_h, projection_p):
    x = x.astype(jnp.float32)
    B, F, E = x.shape
    hp = jax.lax.Precision.HIGHEST
    prods = jnp.stack([x[:, i, :] * x[:, j, :]
                       for i in range(F) for j in range(i + 1, F)], axis=1)
    att = jax.nn.relu(jnp.einsum('bpe,ea->bpa', prods, attention_W,
                                 precision=hp) + attention_b)
    scores = jnp.einsum('bpa,ao->bp', att, projection_h, precision=hp)
    norm = jax.nn.softmax(scores, axis=1)
    att_out = jnp.einsum('bp,bpe->be', norm, prods, precision=hp)
    return jnp.dot(att_out, projection_p, precision=hp)          # (B, 1)


if __name__ == "__main__":
    # Small shapes consistent with an AFM layer over sparse-feature embeddings.
    B, F, E, A = 8, 4, 8, 16  # batch, fields, embedding_dim, attention_factor

    key = jax.random.PRNGKey(0)
    kx, kw, kb, kh, kp = jax.random.split(key, 5)
    x = jax.random.normal(kx, (B, F, E), dtype=jnp.float32)
    attention_W = jax.random.normal(kw, (E, A), dtype=jnp.float32) * 0.1
    attention_b = jax.random.normal(kb, (1, A), dtype=jnp.float32) * 0.1
    projection_h = jax.random.normal(kh, (A, 1), dtype=jnp.float32) * 0.1
    projection_p = jax.random.normal(kp, (E, 1), dtype=jnp.float32) * 0.1

    params = build_afm_params(attention_W, attention_b, projection_h,
                              projection_p, num_fields=F)

    # 1) Tiny batch (single full-extent block).
    out = jax.block_until_ready(afm_forward(x, params))
    ref = afm_reference(x, attention_W, attention_b, projection_h,
                        projection_p)
    assert out.shape == (B, 1)
    # Tolerances absorb bf16 MXU operands + the EUP approximate reciprocal.
    assert jnp.allclose(out, ref, rtol=2e-2, atol=5e-3), (out, ref)

    # 2) Multi-block "parallel" grid with a ragged last batch tile
    #    (no wrapper-side padding pass; DMA clamp handles the remainder).
    B2 = 200
    x2 = jax.random.normal(jax.random.PRNGKey(1), (B2, F, E), dtype=jnp.float32)
    out2 = jax.block_until_ready(afm_forward(x2, params, tile_b=128))
    ref2 = afm_reference(x2, attention_W, attention_b, projection_h,
                         projection_p)
    assert out2.shape == (B2, 1)
    assert jnp.allclose(out2, ref2, rtol=2e-2, atol=5e-3), (out2, ref2)

    # 3) bf16 activations (halves input HBM traffic for this memory-bound
    #    kernel); reference sees the same bf16-rounded inputs.
    x3 = x2.astype(jnp.bfloat16)
    out3 = jax.block_until_ready(afm_forward(x3, params, tile_b=128))
    ref3 = afm_reference(x3.astype(jnp.float32), attention_W, attention_b,
                         projection_h, projection_p)
    assert jnp.allclose(out3, ref3, rtol=2e-2, atol=5e-3), (out3, ref3)

    # TODO(synk): MultiTaskMLP heads / FocalLoss / Adam are training-time
    # members not used in DIGIXNet.forward, so they are not part of the kernel.
    print("KERNEL_OK")
</pallas_src>

<mosaic_0001>
module attributes {stable_mosaic.version = 11 : i64} {
  func.func @_afm_kernel(%arg0: i32, %arg1: memref<32x8xf32, #tpu.memory_space<vmem>>, %arg2: memref<96x48xbf16, #tpu.memory_space<vmem>>, %arg3: memref<96x1xf32, #tpu.memory_space<vmem>>, %arg4: memref<6x96xbf16, #tpu.memory_space<vmem>>, %arg5: memref<6x48xbf16, #tpu.memory_space<vmem>>, %arg6: memref<1x8xf32, #tpu.memory_space<vmem>>) attributes {dimension_semantics = [#tpu.dimension_semantics<parallel>], iteration_bounds = array<i64: 1>, scalar_prefetch = 0 : i64, scratch_operands = 0 : i64, tpu.core_type = #tpu.core_type<tc>, window_params = [{transform_indices = @transform_0, window_bounds = array<i64: 32, 8>}, {pipeline_mode = #tpu.pipeline_mode<synchronous>, transform_indices = @transform_1, window_bounds = array<i64: 96, 48>}, {pipeline_mode = #tpu.pipeline_mode<synchronous>, transform_indices = @transform_2, window_bounds = array<i64: 96, 1>}, {pipeline_mode = #tpu.pipeline_mode<synchronous>, transform_indices = @transform_3, window_bounds = array<i64: 6, 96>}, {pipeline_mode = #tpu.pipeline_mode<synchronous>, transform_indices = @transform_4, window_bounds = array<i64: 6, 48>}, {transform_indices = @transform_5, window_bounds = array<i64: 1, 8>}]} {
    %c0 = arith.constant 0 : index
    %c0_0 = arith.constant 0 : index
    %0 = vector.load %arg1[%c0, %c0_0] : memref<32x8xf32, #tpu.memory_space<vmem>>, vector<32x8xf32>
    %1 = vector.extract_strided_slice %0 {offsets = [0, 0], sizes = [8, 8], strides = [1, 1]} : vector<32x8xf32> to vector<8x8xf32>
    %2 = vector.extract_strided_slice %0 {offsets = [8, 0], sizes = [8, 8], strides = [1, 1]} : vector<32x8xf32> to vector<8x8xf32>
    %3 = arith.mulf %1, %2 : vector<8x8xf32>
    %4 = vector.extract_strided_slice %0 {offsets = [0, 0], sizes = [8, 8], strides = [1, 1]} : vector<32x8xf32> to vector<8x8xf32>
    %5 = vector.extract_strided_slice %0 {offsets = [16, 0], sizes = [8, 8], strides = [1, 1]} : vector<32x8xf32> to vector<8x8xf32>
    %6 = arith.mulf %4, %5 : vector<8x8xf32>
    %7 = vector.extract_strided_slice %0 {offsets = [0, 0], sizes = [8, 8], strides = [1, 1]} : vector<32x8xf32> to vector<8x8xf32>
    %8 = vector.extract_strided_slice %0 {offsets = [24, 0], sizes = [8, 8], strides = [1, 1]} : vector<32x8xf32> to vector<8x8xf32>
    %9 = arith.mulf %7, %8 : vector<8x8xf32>
    %10 = vector.extract_strided_slice %0 {offsets = [8, 0], sizes = [8, 8], strides = [1, 1]} : vector<32x8xf32> to vector<8x8xf32>
    %11 = vector.extract_strided_slice %0 {offsets = [16, 0], sizes = [8, 8], strides = [1, 1]} : vector<32x8xf32> to vector<8x8xf32>
    %12 = arith.mulf %10, %11 : vector<8x8xf32>
    %13 = vector.extract_strided_slice %0 {offsets = [8, 0], sizes = [8, 8], strides = [1, 1]} : vector<32x8xf32> to vector<8x8xf32>
    %14 = vector.extract_strided_slice %0 {offsets = [24, 0], sizes = [8, 8], strides = [1, 1]} : vector<32x8xf32> to vector<8x8xf32>
    %15 = arith.mulf %13, %14 : vector<8x8xf32>
    %16 = vector.extract_strided_slice %0 {offsets = [16, 0], sizes = [8, 8], strides = [1, 1]} : vector<32x8xf32> to vector<8x8xf32>
    %17 = vector.extract_strided_slice %0 {offsets = [24, 0], sizes = [8, 8], strides = [1, 1]} : vector<32x8xf32> to vector<8x8xf32>
    %18 = arith.mulf %16, %17 : vector<8x8xf32>
    %19 = tpu.concatenate %3, %6, %9, %12, %15, %18 in 0 : vector<8x8xf32>, vector<8x8xf32>, vector<8x8xf32>, vector<8x8xf32>, vector<8x8xf32>, vector<8x8xf32> -> vector<48x8xf32>
    %20 = arith.truncf %19 : vector<48x8xf32> to vector<48x8xbf16>
    %c0_1 = arith.constant 0 : index
    %c0_2 = arith.constant 0 : index
    %21 = vector.load %arg2[%c0_1, %c0_2] : memref<96x48xbf16, #tpu.memory_space<vmem>>, vector<96x48xbf16>
    %cst = arith.constant dense<0.000000e+00> : vector<96x8xf32>
    %22 = tpu.matmul %21, %20, %cst {dimension_numbers = #tpu.dot_dimension_numbers<[1], [0], [0], [1], [0, 0, 1, 1], [], []>} : vector<96x48xbf16>, vector<48x8xbf16>, vector<96x8xf32> -> vector<96x8xf32>
    %c0_3 = arith.constant 0 : index
    %c0_4 = arith.constant 0 : index
    %23 = vector.load %arg3[%c0_3, %c0_4] : memref<96x1xf32, #tpu.memory_space<vmem>>, vector<96x1xf32>
    %24 = vector.broadcast %23 : vector<96x1xf32> to vector<96x8xf32>
    %25 = arith.addf %22, %24 : vector<96x8xf32>
    %cst_5 = arith.constant 0.000000e+00 : f32
    %26 = vector.broadcast %cst_5 : f32 to vector<96x8xf32>
    %27 = arith.maximumf %25, %26 : vector<96x8xf32>
    %c0_6 = arith.constant 0 : index
    %c0_7 = arith.constant 0 : index
    %28 = vector.load %arg4[%c0_6, %c0_7] : memref<6x96xbf16, #tpu.memory_space<vmem>>, vector<6x96xbf16>
    %29 = arith.truncf %27 : vector<96x8xf32> to vector<96x8xbf16>
    %cst_8 = arith.constant dense<0.000000e+00> : vector<6x8xf32>
    %30 = tpu.matmul %28, %29, %cst_8 {dimension_numbers = #tpu.dot_dimension_numbers<[1], [0], [0], [1], [0, 0, 1, 1], [], []>} : vector<6x96xbf16>, vector<96x8xbf16>, vector<6x8xf32> -> vector<6x8xf32>
    %c0_9 = arith.constant 0 : index
    %c0_10 = arith.constant 0 : index
    %31 = vector.load %arg5[%c0_9, %c0_10] : memref<6x48xbf16, #tpu.memory_space<vmem>>, vector<6x48xbf16>
    %cst_11 = arith.constant dense<0.000000e+00> : vector<6x8xf32>
    %32 = tpu.matmul %31, %20, %cst_11 {dimension_numbers = #tpu.dot_dimension_numbers<[1], [0], [0], [1], [0, 0, 1, 1], [], []>} : vector<6x48xbf16>, vector<48x8xbf16>, vector<6x8xf32> -> vector<6x8xf32>
    %cst_12 = arith.constant dense<0xFF800000> : vector<8xf32>
    %33 = vector.multi_reduction <maximumf>, %30, %cst_12 [0] : vector<6x8xf32> to vector<8xf32>
    %34 = vector.shape_cast %33 : vector<8xf32> to vector<1x8xf32>
    %35 = vector.broadcast %34 : vector<1x8xf32> to vector<6x8xf32>
    %36 = arith.subf %30, %35 : vector<6x8xf32>
    %37 = math.exp %36 : vector<6x8xf32>
    %cst_13 = arith.constant dense<0.000000e+00> : vector<8xf32>
    %38 = vector.multi_reduction <add>, %37, %cst_13 [0] : vector<6x8xf32> to vector<8xf32>
    %39 = vector.shape_cast %38 : vector<8xf32> to vector<1x8xf32>
    %40 = arith.mulf %37, %32 : vector<6x8xf32>
    %cst_14 = arith.constant dense<0.000000e+00> : vector<8xf32>
    %41 = vector.multi_reduction <add>, %40, %cst_14 [0] : vector<6x8xf32> to vector<8xf32>
    %42 = vector.shape_cast %41 : vector<8xf32> to vector<1x8xf32>
    %43 = tpu.reciprocal %39 {approx = true} : vector<1x8xf32> -> vector<1x8xf32>
    %44 = arith.mulf %42, %43 : vector<1x8xf32>
    %c0_15 = arith.constant 0 : index
    %c0_16 = arith.constant 0 : index
    %45 = vector.load %arg6[%c0_15, %c0_16] : memref<1x8xf32, #tpu.memory_space<vmem>>, vector<1x8xf32>
    tpu.vector_store %arg6[%c0_15, %c0_16], %44 {strides = array<i32>} : memref<1x8xf32, #tpu.memory_space<vmem>>, vector<1x8xf32>,
    return
  }
  func.func @transform_0(%arg0: i32) -> (i32, i32) {
    %c0_i32 = arith.constant 0 : i32
    %c0_i32_0 = arith.constant 0 : i32
    return %c0_i32, %arg0 : i32, i32
  }
  func.func @transform_1(%arg0: i32) -> (i32, i32) {
    %c0_i32 = arith.constant 0 : i32
    %c0_i32_0 = arith.constant 0 : i32
    %c0_i32_1 = arith.constant 0 : i32
    return %c0_i32, %c0_i32_0 : i32, i32
  }
  func.func @transform_2(%arg0: i32) -> (i32, i32) {
    %c0_i32 = arith.constant 0 : i32
    %c0_i32_0 = arith.constant 0 : i32
    %c0_i32_1 = arith.constant 0 : i32
    return %c0_i32, %c0_i32_0 : i32, i32
  }
  func.func @transform_3(%arg0: i32) -> (i32, i32) {
    %c0_i32 = arith.constant 0 : i32
    %c0_i32_0 = arith.constant 0 : i32
    %c0_i32_1 = arith.constant 0 : i32
    return %c0_i32, %c0_i32_0 : i32, i32
  }
  func.func @transform_4(%arg0: i32) -> (i32, i32) {
    %c0_i32 = arith.constant 0 : i32
    %c0_i32_0 = arith.constant 0 : i32
    %c0_i32_1 = arith.constant 0 : i32
    return %c0_i32, %c0_i32_0 : i32, i32
  }
  func.func @transform_5(%arg0: i32) -> (i32, i32) {
    %c0_i32 = arith.constant 0 : i32
    %c0_i32_0 = arith.constant 0 : i32
    return %c0_i32, %arg0 : i32, i32
  }
}

</mosaic_0001>

<bundles_post_ra>
// kernel: tpu_custom_call.1
= control target key start
LH: loop header
LB: loop body
LE: loop exit
PB: predicated region body
PF: predicated region fallthrough
CT: control target
= control target key end

     0   :  { %vm149_vm0 = vcmask 392192   ;;  %v518_v7 = vmov 0   ;;  %s657_s0 = inlined_call_operand.vmem [shape: f32[32,8], index: 0, kind: input, shape index: {}]   ;;  %s658_s1 = inlined_call_operand.vmem [shape: bf16[96,48], index: 1, kind: input, shape index: {}]   ;;  %s659_s2 = inlined_call_operand.vmem [shape: f32[96,1], index: 2, kind: input, shape index: {}]   ;;  %s660_s3 = inlined_call_operand.vmem [shape: bf16[6,96], index: 3, kind: input, shape index: {}]   ;;  %s661_s4 = inlined_call_operand.vmem [shape: bf16[6,48], index: 4, kind: input, shape index: {}]   ;;  %s662_s5 = inlined_call_operand.hbm [shape: f32[1,8], index: 5, kind: output, shape index: {}]  }
   0x1   :  { %v22_v0 = vld [vmem:[%s657_s0] sm:$0xff]  ;;  %v23_v1 = vld [vmem:[%s657_s0 + $0x8] sm:$0xff]  ;;  %v24_v2 = vld [vmem:[%s657_s0 + $0x10] sm:$0xff]  ;;  %482 = vset.pattern.permute.xlu0 %v518_v7  ;;  %483 = vset.pattern.permute.xlu1 %v518_v7 }
   0x2   :  { %v26_v3 = vmul.f32 %v23_v1, %v22_v0  ;;  %v27_v4 = vmul.f32 %v24_v2, %v22_v0  ;;  %v25_v5 = vld [vmem:[%s657_s0 + $0x18] sm:$0xff]  ;;  %v29_v6 = vmul.f32 %v24_v2, %v23_v1  ;;  %v484_v9 = vld [vmem:[%s658_s1] sm:$0xff]   ;;  %v49_v16 = vld [vmem:[%s659_s2 + $0x10] sm:$0xff] }
   0x3   :  { %v28_v8 = vmul.f32 %v25_v5, %v22_v0  ;;  %v30_v11 = vmul.f32 %v25_v5, %v23_v1  ;;  %v31_v12 = vmul.f32 %v25_v5, %v24_v2  ;;  %440 = vmatprep.mubr.msk.bf16.mxu0 %vm149_vm0, %v484_v9  ;;  %v47_v15 = vld [vmem:[%s659_s2] sm:$0xff]  ;;  %71 = vperm.xlu1 %483, %v49_v16   ;;  %v48_v17 = vld [vmem:[%s659_s2 + $0x8] sm:$0xff]  ;;  %v50_v18 = vld [vmem:[%s659_s2 + $0x18] sm:$0xff] }
   0x4   :  { %v32_v10 = vpack.c.bf16 %v27_v4, %v26_v3  ;;  %61 = vperm.xlu0 %482, %v47_v15  }
   0x5   :  { %v33_v13 = vpack.c.bf16 %v29_v6, %v28_v8  ;;  %v34_v14 = vpack.c.bf16 %v31_v12, %v30_v11 }
   0x6   :  { %434 = vmatprep.subr.bf16.mxu0 %v32_v10 }
   0x7   :  { %435 = vmatpush3.bf16.msra.mxu0 %v32_v10 }
   0x8   :  { %436 = vmatprep.subr.bf16.mxu0 %v33_v13 }
   0xb   :  { %437 = vmatpush3.bf16.msra.mxu0 %v33_v13 }
   0xc   :  { %438 = vmatprep.subr.bf16.mxu0 %v34_v14 }
   0xd   :  { %10 = vsyncpa [#allocation3], 0  ;;  %66 = vperm.xlu0 %482, %v48_v17   ;;  %76 = vperm.xlu1 %483, %v50_v18   ;;  %v485_v19 = vld [vmem:[%s658_s1 + $0x8] sm:$0xff]   ;;  %v51_v20 = vld [vmem:[%s659_s2 + $0x20] sm:$0xff]  ;;  %v519_v32 = vmov 0.0   ;;  %vm520_vm1 = vmmov 0  }
   0xe   :  { %v52_v21 = vld [vmem:[%s659_s2 + $0x28] sm:$0xff]  ;;  %v486_v22 = vld [vmem:[%s658_s1 + $0x10] sm:$0xff]   ;;  %v54_v24 = vld [vmem:[%s659_s2 + $0x38] sm:$0xff]  ;;  %452 = vmatprep.subr.bf16.mxu1 %v519_v32  ;;  %464 = vmatprep.mubr.msk.bf16.mxu1 %vm520_vm1, %v519_v32  ;;  %vm268_vm2 = vcmask 785408   ;;  %vm356_vm3 = vcmask 62464   ;;  %vm384_vm4 = vcmask 57344  }
   0xf   :  { %439 = vmatpush3.bf16.msra.mxu0 %v34_v14  ;;  %v53_v23 = vld [vmem:[%s659_s2 + $0x30] sm:$0xff]  ;;  %v487_v25 = vld [vmem:[%s658_s1 + $0x18] sm:$0xff]   ;;  %v55_v26 = vld [vmem:[%s659_s2 + $0x40] sm:$0xff] }
  0x10   :  { %v56_v27 = vld [vmem:[%s659_s2 + $0x48] sm:$0xff]  ;;  %v488_v28 = vld [vmem:[%s658_s1 + $0x20] sm:$0xff]   ;;  %v57_v29 = vld [vmem:[%s659_s2 + $0x50] sm:$0xff]  ;;  %468 = vmatprep.subr.bf16.mxu0 %v519_v32 }
  0x11   :  { %81 = vperm.xlu0 %482, %v51_v20   ;;  %86 = vperm.xlu1 %483, %v52_v21   ;;  %v58_v30 = vld [vmem:[%s659_s2 + $0x58] sm:$0xff]  ;;  %v489_v31 = vld [vmem:[%s658_s1 + $0x28] sm:$0xff]   ;;  %v312_v33 = vld [vmem:[%s661_s4] sm:$0x7] }
  0x12   :  { %441 = vmatmul.mubr.msk.bf16.vlgmr.msra.gmra.mrb[0].mxu0 %vm149_vm0, %v485_v19 }
  0x13   :  { %444 = vmatprep.mubr.msk.bf16.mxu0 %vm149_vm0, %v486_v22  ;;  %469 = vmatpush3.bf16.msra.mxu0 %v32_v10 }
  0x14   :  { %470 = vmatprep.subr.bf16.mxu0 %v519_v32 }
  0x15   :  { %91 = vperm.xlu0 %482, %v53_v23   ;;  %96 = vperm.xlu1 %483, %v54_v24   ;;  %v261_v24 = vld [vmem:[%s660_s3] sm:$0x7]  ;;  %s521_s3 = smov [#allocation2]  }
  0x16   :  { %s392_s11 = sshll.u32 %s521_s3, 4  ;;  %s393_s11 = int_to_ptr.vmem [resolvable:$true] %s392_s11 }
  0x17   :  { %471 = vmatpush3.bf16.msra.mxu0 %v33_v13  ;;  %s494_s12 = scalar_lea.vmem %s393_s11, 16  ;;  %s498_s13 = scalar_lea.vmem %s393_s11, 32 }
  0x18   :  { %472 = vmatprep.subr.bf16.mxu0 %v519_v32  ;;  %p495_p0 = scmp.ne.s32.totalorder %s393_s11, %s494_s12  ;;  %p499_p1 = scmp.lt.s32.totalorder %s393_s11, %s393_s11 }
  0x19   :  { %101 = vperm.xlu0 %482, %v55_v26   ;;  %106 = vperm.xlu1 %483, %v56_v27   ;;  %p500_p2 = scmp.lt.s32.totalorder %s498_s13, %s494_s12 }
  0x1a   :  { %445 = vmatmul.mubr.msk.bf16.gmra.mrb[4].mxu0 %vm149_vm0, %v487_v25 }
  0x1b   :  { %448 = vmatprep.mubr.msk.bf16.mxu0 %vm149_vm0, %v488_v28  ;;  %473 = vmatpush3.bf16.msra.mxu0 %v34_v14  ;;  %p501_p3 = por %p500_p2, %p499_p1 }
  0x1d   :  { %111 = vperm.xlu0 %482, %v57_v29   ;;  %116 = vperm.xlu1 %483, %v58_v30   ;;  %p502_p4 = pnand %p501_p3, %p495_p0 }
  0x22   :  { %449 = vmatmul.mubr.msk.bf16.gmra.mrb[8].mxu0 %vm149_vm0, %v489_v31 }
  0x23   :  { %474 = vmatprep.mubr.msk.bf16.mxu0 %vm520_vm1, %v519_v32 }
  0x2a   :  { %475 = vmatmul.mubr.msk.bf16.vlgmr.msra.gmra.mrb[12].mxu0 %vm149_vm0, %v312_v33 }
  0x82   :  { %v72_v35 = vpop.permute.xlu1 %71 }
  0x83   :  { %v62_v34 = vpop.permute.xlu0 %61 }
  0x8c   :  { %v67_v36 = vpop.permute.xlu0 %66  ;;  %v77_v37 = vpop.permute.xlu1 %76 }
  0x90   :  { %v82_v38 = vpop.permute.xlu0 %81  ;;  %v87_v39 = vpop.permute.xlu1 %86 }
  0x94   :  { %v92_v47 = vpop.permute.xlu0 %91  ;;  %v97_v51 = vpop.permute.xlu1 %96 }
  0x98   :  { %v102_v59 = vpop.permute.xlu0 %101  ;;  %v107_v0 = vpop.permute.xlu1 %106 }
  0x9c   :  { %v112_v7 = vpop.permute.xlu0 %111  ;;  %v117_v12 = vpop.permute.xlu1 %116 }
  0xe5   :  { %v442_v40 = vpop.f32.mrb[0].mxu0 }
  0xe6   :  { %v211_v41 = vadd.f32 %v442_v40, %v72_v35  ;;  %v202_v42 = vpop.f32.mrb[1].mxu0 }
  0xe7   :  { %v203_v43 = vadd.f32 %v202_v42, %v62_v34  ;;  %v443_v44 = vpop.f32.mrb[2].mxu0 }
  0xe8   :  { %v214_v45 = vadd.f32 %v443_v44, %v77_v37  ;;  %v205_v46 = vpop.f32.mrb[3].mxu0  ;;  %v251_v49 = vmax.f32 %v211_v41, 0.0 }
  0xe9   :  { %v206_v48 = vadd.f32 %v205_v46, %v67_v36  ;;  %v249_v52 = vmax.f32 %v203_v43, 0.0 }
  0xea   :  { %v252_v50 = vmax.f32 %v214_v45, 0.0 }
  0xeb   :  { %v250_v53 = vmax.f32 %v206_v48, 0.0 }
  0xec   :  { %v263_v54 = vpack.c.bf16 %v252_v50, %v251_v49 }
  0xed   :  { %v446_v55 = vpop.f32.mrb[4].mxu0  ;;  %v262_v56 = vpack.c.bf16 %v250_v53, %v249_v52 }
  0xee   :  { %v227_v57 = vadd.f32 %v446_v55, %v92_v47  ;;  %v218_v58 = vpop.f32.mrb[5].mxu0 }
  0xef   :  { %v219_v60 = vadd.f32 %v218_v58, %v82_v38  ;;  %v447_v61 = vpop.f32.mrb[6].mxu0  ;;  %453 = vmatpush3.bf16.msra.mxu1 %v262_v56 }
  0xf0   :  { %v230_v62 = vadd.f32 %v447_v61, %v97_v51  ;;  %v221_v63 = vpop.f32.mrb[7].mxu0  ;;  %454 = vmatprep.subr.bf16.mxu1 %v519_v32  ;;  %v255_v2 = vmax.f32 %v227_v57, 0.0 }
  0xf1   :  { %v222_v1 = vadd.f32 %v221_v63, %v87_v39  ;;  %v253_v4 = vmax.f32 %v219_v60, 0.0 }
  0xf2   :  { %v256_v3 = vmax.f32 %v230_v62, 0.0 }
  0xf3   :  { %v254_v5 = vmax.f32 %v222_v1, 0.0  ;;  %455 = vmatpush3.bf16.msra.mxu1 %v263_v54 }
  0xf4   :  { %v265_v6 = vpack.c.bf16 %v256_v3, %v255_v2  ;;  %456 = vmatprep.subr.bf16.mxu1 %v519_v32 }
  0xf5   :  { %v264_v8 = vpack.c.bf16 %v254_v5, %v253_v4  ;;  %v450_v9 = vpop.f32.mrb[8].mxu0 }
  0xf6   :  { %v243_v10 = vadd.f32 %v450_v9, %v112_v7  ;;  %v234_v11 = vpop.f32.mrb[9].mxu0 }
  0xf7   :  { %v235_v13 = vadd.f32 %v234_v11, %v102_v59  ;;  %v451_v14 = vpop.f32.mrb[10].mxu0  ;;  %457 = vmatpush3.bf16.msra.mxu1 %v264_v8 }
  0xf8   :  { %v246_v15 = vadd.f32 %v451_v14, %v117_v12  ;;  %v237_v16 = vpop.f32.mrb[11].mxu0  ;;  %458 = vmatprep.subr.bf16.mxu1 %v519_v32  ;;  %v259_v18 = vmax.f32 %v243_v10, 0.0 }
  0xf9   :  { %v238_v17 = vadd.f32 %v237_v16, %v107_v0  ;;  %v257_v20 = vmax.f32 %v235_v13, 0.0 }
  0xfa   :  { %v260_v19 = vmax.f32 %v246_v15, 0.0 }
  0xfb   :  { %v258_v21 = vmax.f32 %v238_v17, 0.0  ;;  %459 = vmatpush3.bf16.msra.mxu1 %v265_v6 }
  0xfc   :  { %v267_v22 = vpack.c.bf16 %v260_v19, %v259_v18  ;;  %460 = vmatprep.subr.bf16.mxu1 %v519_v32 }
  0xfd   :  { %v266_v23 = vpack.c.bf16 %v258_v21, %v257_v20  ;;  %v350_v25 = vpop.f32.mrb[12].mxu0 }
  0xfe   :  { %v476_v26 = vpop.f32.mrb[13].mxu0 }
  0xff   :  { %461 = vmatpush3.bf16.msra.mxu1 %v266_v23  ;;  %v353_v27 = vpop.f32.mrb[14].mxu0 }
 0x100   :  { %462 = vmatprep.subr.bf16.mxu1 %v519_v32  ;;  %v477_v28 = vpop.f32.mrb[15].mxu0 }
 0x103   :  { %463 = vmatpush3.bf16.msra.mxu1 %v267_v22 }
 0x106   :  { %465 = vmatmul.mubr.msk.bf16.vlgmr.msra.gmra.mrb[0].mxu1 %vm268_vm2, %v261_v24 }
 0x1d9   :  { %v306_v29 = vpop.f32.mrb[0].mxu1 }
 0x1da   :  { %v357_v30 = vsel %vm356_vm3, %v306_v29, -inf  ;;  %v466_v31 = vpop.f32.mrb[1].mxu1 }
 0x1db   :  { %v358_v33 = vrot.slane %v357_v30, 4  ;;  %v309_v34 = vpop.f32.mrb[2].mxu1 }
 0x1dc   :  { %v467_v35 = vpop.f32.mrb[3].mxu1 }
 0x1dd   :  { %v359_v32 = vmax.f32 %v357_v30, %v358_v33 }
 0x1df   :  { %v360_v36 = vrot.slane %v359_v32, 2 }
 0x1e1   :  { %v361_v37 = vmax.f32 %v359_v32, %v360_v36 }
 0x1e3   :  { %v362_v38 = vrot.slane %v361_v37, 1 }
 0x1e5   :  { %v363_v39 = vmax.f32 %v361_v37, %v362_v38 }
 0x1e7   :  { %v364_v40 = vsub.f32 %v306_v29, %v363_v39 }
 0x1e9   :  { %v365_v41 = vmul.f32 1.442695, %v364_v40 }
 0x1eb   :  { %490 = vpow2.f32 %v365_v41 }
 0x1f5   :  { %v491_v42 = vpop.eup %490 }
 0x1f6   :  { %v367_v43 = vsel %vm356_vm3, %v491_v42, 0.0  ;;  %v374_v44 = vmul.f32 %v491_v42, %v350_v25 }
 0x1f7   :  { %v368_v45 = vrot.slane %v367_v43, 4 }
 0x1f8   :  { %v375_v46 = vsel %vm356_vm3, %v374_v44, 0.0 }
 0x1f9   :  { %v369_v47 = vadd.f32 %v368_v45, %v367_v43  ;;  %v376_v48 = vrot.slane %v375_v46, 4 }
 0x1fb   :  { %v370_v49 = vrot.slane %v369_v47, 2  ;;  %v377_v50 = vadd.f32 %v376_v48, %v375_v46 }
 0x1fd   :  { %v371_v51 = vadd.f32 %v370_v49, %v369_v47  ;;  %v378_v53 = vrot.slane %v377_v50, 2 }
 0x1ff   :  { %v372_v52 = vrot.slane %v371_v51, 1  ;;  %v379_v55 = vadd.f32 %v378_v53, %v377_v50 }
 0x201   :  { %v373_v54 = vadd.f32 %v372_v52, %v371_v51  ;;  %v380_v56 = vrot.slane %v379_v55, 1 }
 0x203   :  { %492 = vrcp.f32 %v373_v54  ;;  %v381_v57 = vadd.f32 %v380_v56, %v379_v55 }
 0x20d   :  { %v493_v58 = vpop.eup %492 }
 0x20e   :  { %v383_v59 = vmul.f32 %v493_v58, %v381_v57 }
 0x210   :  { %385 = vst.msk [vmem:[#allocation2] sm:$0x1] %vm384_vm4, %v383_v59 }
 0x211   :  { %505 = shalt.err (!%p502_p4)
}
 0x212   :  { %s506_s16 = scalar_lea.hbm %s662_s5, 16 }
 0x213   :  { %p507_p5 = scmp.ne.s32.totalorder %s662_s5, %s506_s16  ;;  %p510_p6 = scmp.lt.u32.totalorder %s506_s16, %s662_s5 }
 0x215   :  { %p512_p7 = pnand %p510_p6, %p507_p5 }
 0x217   :  { %515 = shalt.err (!%p512_p7)
}
 0x218   :  { %395 = dma.vmem_to_hbm [thread:$0]  %s393_s11, 16, %s662_s5, [#allocation3]  }
 0x219   :  { %516 = dma.done.wait [#allocation3], 16  }
 0x21a   :  { %517 = vsyncadd [#allocation3], 4294967280 }
 0x21b   :  { %399 = vsyncpa [#allocation3], 1 }

</bundles_post_ra>
